<compile_context>
chip_gen: v7x
topology: tpu7x:2x2x1
jax: 0.10.0
libtpu: 0.0.40
codegen_flags: <defaults>
</compile_context>

<pallas_src>
import jax
import jax.numpy as jnp
from jax import lax
from jax.experimental import pallas as pl
from jax.experimental.pallas import tpu as pltpu


def _make_maxpool_kernel(H, W):
    HW = H * W

    def kernel(x_ref, o_ref):
        x = x_ref[...]                                      # (B, H*W)

        # Compact (1, H*W) edge masks, broadcast over the B image rows.
        hw = lax.broadcasted_iota(jnp.int32, (1, HW), 1)
        last_col = (hw % W) == (W - 1)                      # j == W-1
        last_row = hw >= (H - 1) * W                        # i == H-1

        # j -> j+1 shift (replicate the last column at the edge).
        x_w = jnp.where(last_col, x, jnp.roll(x, -1, axis=1))
        m = jnp.maximum(x, x_w)

        # i -> i+1 shift (replicate the last row at the edge).
        m_h = jnp.where(last_row, m, jnp.roll(m, -W, axis=1))
        o_ref[...] = jnp.maximum(m, m_h)

    return kernel


def _choose_block_rows(nc, hw, itemsize, target_bytes=1 << 20):
    """How many (n, c) images to process per grid step."""
    packing = max(1, 4 // itemsize)
    sub = 8 * packing                        # sublane granularity for dtype
    if nc <= sub:
        return nc                            # full leading dim: always legal
    b = target_bytes // (hw * itemsize)
    b = max(sub, (b // sub) * sub)           # multiple of sublane granularity
    # Keep at least 2 grid steps so both v7x TensorCores stay busy.
    half = ((nc + 1) // 2 + sub - 1) // sub * sub
    return min(b, half)


def maxpool_stride1(x, *, target_block_bytes=1 << 20):
    """x: (N, C, H, W) -> (N, C, H, W); 2x2 max pool, stride 1, replicate pad."""
    N, C, H, W = x.shape
    NC, HW = N * C, H * W
    itemsize = jnp.dtype(x.dtype).itemsize

    xf = x.reshape(NC, HW)                   # free row-major reshape

    B = _choose_block_rows(NC, HW, itemsize, target_block_bytes)
    grid = (pl.cdiv(NC, B),)

    block_bytes = B * HW * itemsize
    # in + out, double-buffered (4 buffers) + headroom; stays modest for the
    # target ~1 MiB blocks so it fits v5e's / v7x's tighter scoped defaults.
    vmem_limit = int(min(128 * 1024 * 1024,
                         max(32 * 1024 * 1024, 5 * block_bytes)))

    total = N * C * H * W
    cost = pl.CostEstimate(
        flops=3 * total,                     # 3 maxima per output element
        transcendentals=0,
        bytes_accessed=2 * total * itemsize, # read + write
    )

    out = pl.pallas_call(
        _make_maxpool_kernel(H, W),
        out_shape=jax.ShapeDtypeStruct((NC, HW), x.dtype),
        grid_spec=pltpu.PrefetchScalarGridSpec(
            num_scalar_prefetch=0,
            grid=grid,
            in_specs=[pl.BlockSpec((B, HW), lambda i: (i, 0))],
            out_specs=pl.BlockSpec((B, HW), lambda i: (i, 0)),
        ),
        compiler_params=pltpu.CompilerParams(
            dimension_semantics=("parallel",),
            vmem_limit_bytes=vmem_limit,
        ),
        cost_estimate=cost,
    )(xf)

    return out.reshape(N, C, H, W)


def _reference(x):
    # Pure-JAX reference: replicate-pad right/bottom, then 2x2 max, stride 1.
    # (Works for any dtype; no -inf init needed.)
    xp = jnp.pad(x, ((0, 0), (0, 0), (0, 1), (0, 1)), mode="edge")
    return jnp.maximum(
        jnp.maximum(xp[:, :, :-1, :-1], xp[:, :, :-1, 1:]),
        jnp.maximum(xp[:, :, 1:, :-1], xp[:, :, 1:, 1:]),
    )


if __name__ == "__main__":
    key = jax.random.PRNGKey(0)
    cases = [
        ((2, 4, 16, 16), jnp.float32),    # requested small test shape
        ((1, 96, 13, 13), jnp.float32),   # darknet-style map, grid of 2
        ((3, 5, 13, 13), jnp.float32),    # N*C not a multiple of 8 (partial block)
        ((2, 16, 16, 16), jnp.bfloat16),  # bf16 end-to-end
    ]
    for shape, dtype in cases:
        key, sub = jax.random.split(key)
        x = jax.random.normal(sub, shape, dtype=jnp.float32).astype(dtype)

        out = maxpool_stride1(x)
        jax.block_until_ready(out)

        ref = _reference(x)
        assert out.shape == x.shape
        assert out.dtype == x.dtype
        # Max-pool is an exact selection, so results must match bit-for-bit.
        assert jnp.array_equal(out, ref), f"mismatch for {shape} {dtype}"

    print("KERNEL_OK")
</pallas_src>

<mosaic_0001>
module attributes {stable_mosaic.version = 11 : i64} {
  func.func @kernel(%arg0: i32, %arg1: memref<8x256xf32, #tpu.memory_space<vmem>>, %arg2: memref<8x256xf32, #tpu.memory_space<vmem>>) attributes {dimension_semantics = [#tpu.dimension_semantics<parallel>], iteration_bounds = array<i64: 1>, scalar_prefetch = 0 : i64, scratch_operands = 0 : i64, tpu.core_type = #tpu.core_type<tc>, window_params = [{transform_indices = @transform_0, window_bounds = array<i64: 8, 256>}, {transform_indices = @transform_1, window_bounds = array<i64: 8, 256>}]} {
    %c0 = arith.constant 0 : index
    %c0_0 = arith.constant 0 : index
    %0 = vector.load %arg1[%c0, %c0_0] : memref<8x256xf32, #tpu.memory_space<vmem>>, vector<8x256xf32>
    %1 = tpu.iota {dimensions = array<i32: 1>} : vector<1x256xi32>
    %c16_i32 = arith.constant 16 : i32
    %c0_i32 = arith.constant 0 : i32
    %2 = arith.cmpi eq, %c16_i32, %c0_i32 : i32
    %c1_i32 = arith.constant 1 : i32
    %3 = arith.select %2, %c1_i32, %c16_i32 : i32
    %4 = vector.broadcast %3 : i32 to vector<1x256xi32>
    %5 = arith.remsi %1, %4 : vector<1x256xi32>
    %c0_i32_1 = arith.constant 0 : i32
    %6 = vector.broadcast %c0_i32_1 : i32 to vector<1x256xi32>
    %7 = arith.cmpi ne, %5, %6 : vector<1x256xi32>
    %c0_i32_2 = arith.constant 0 : i32
    %8 = vector.broadcast %c0_i32_2 : i32 to vector<1x256xi32>
    %9 = arith.cmpi slt, %5, %8 : vector<1x256xi32>
    %c0_i32_3 = arith.constant 0 : i32
    %10 = arith.cmpi slt, %3, %c0_i32_3 : i32
    %11 = vector.broadcast %10 : i1 to vector<1x256xi1>
    %12 = vector.broadcast %11 : vector<1x256xi1> to vector<1x256xi1>
    %13 = arith.xori %9, %12 : vector<1x256xi1>
    %14 = arith.andi %13, %7 : vector<1x256xi1>
    %15 = vector.broadcast %3 : i32 to vector<1x256xi32>
    %16 = arith.addi %5, %15 : vector<1x256xi32>
    %17 = arith.select %14, %16, %5 : vector<1x256xi1>, vector<1x256xi32>
    %c15_i32 = arith.constant 15 : i32
    %18 = vector.broadcast %c15_i32 : i32 to vector<1x256xi32>
    %19 = arith.cmpi eq, %17, %18 : vector<1x256xi32>
    %c240_i32 = arith.constant 240 : i32
    %20 = vector.broadcast %c240_i32 : i32 to vector<1x256xi32>
    %21 = arith.cmpi sge, %1, %20 : vector<1x256xi32>
    %22 = vector.extract_strided_slice %0 {offsets = [0, 1], sizes = [8, 255], strides = [1, 1]} : vector<8x256xf32> to vector<8x255xf32>
    %23 = vector.extract_strided_slice %0 {offsets = [0, 0], sizes = [8, 1], strides = [1, 1]} : vector<8x256xf32> to vector<8x1xf32>
    %24 = tpu.concatenate %22, %23 in 1 : vector<8x255xf32>, vector<8x1xf32> -> vector<8x256xf32>
    %25 = vector.shape_cast %19 : vector<1x256xi1> to vector<1x256xi1>
    %26 = vector.broadcast %25 : vector<1x256xi1> to vector<8x256xi1>
    %27 = arith.select %26, %0, %24 : vector<8x256xi1>, vector<8x256xf32>
    %28 = arith.maximumf %0, %27 : vector<8x256xf32>
    %29 = vector.extract_strided_slice %28 {offsets = [0, 16], sizes = [8, 240], strides = [1, 1]} : vector<8x256xf32> to vector<8x240xf32>
    %30 = vector.extract_strided_slice %28 {offsets = [0, 0], sizes = [8, 16], strides = [1, 1]} : vector<8x256xf32> to vector<8x16xf32>
    %31 = tpu.concatenate %29, %30 in 1 : vector<8x240xf32>, vector<8x16xf32> -> vector<8x256xf32>
    %32 = vector.shape_cast %21 : vector<1x256xi1> to vector<1x256xi1>
    %33 = vector.broadcast %32 : vector<1x256xi1> to vector<8x256xi1>
    %34 = arith.select %33, %28, %31 : vector<8x256xi1>, vector<8x256xf32>
    %35 = arith.maximumf %28, %34 : vector<8x256xf32>
    %c0_4 = arith.constant 0 : index
    %c0_5 = arith.constant 0 : index
    %36 = vector.load %arg2[%c0_4, %c0_5] : memref<8x256xf32, #tpu.memory_space<vmem>>, vector<8x256xf32>
    tpu.vector_store %arg2[%c0_4, %c0_5], %35 {strides = array<i32>} : memref<8x256xf32, #tpu.memory_space<vmem>>, vector<8x256xf32>,
    return
  }
  func.func @transform_0(%arg0: i32) -> (i32, i32) {
    %c0_i32 = arith.constant 0 : i32
    %c0_i32_0 = arith.constant 0 : i32
    return %arg0, %c0_i32 : i32, i32
  }
  func.func @transform_1(%arg0: i32) -> (i32, i32) {
    %c0_i32 = arith.constant 0 : i32
    %c0_i32_0 = arith.constant 0 : i32
    return %arg0, %c0_i32 : i32, i32
  }
}

</mosaic_0001>

<bundles_post_ra>
// kernel: tpu_custom_call.1
= control target key start
LH: loop header
LB: loop body
LE: loop exit
PB: predicated region body
PF: predicated region fallthrough
CT: control target
= control target key end

     0   :  { %6 = vsyncpa [#allocation3], 0  ;;  %s201_s0 = inlined_call_operand.hbm [shape: f32[8,256], index: 0, kind: input, shape index: {}]   ;;  %s202_s1 = inlined_call_operand.hbm [shape: f32[8,256], index: 1, kind: output, shape index: {}]  }
   0x1   :  { %7 = vsyncpa [#allocation4], 0  ;;  %s163_s6 = smov [#allocation2]   ;;  %s115_s10 = scalar_lea.hbm %s201_s0, 256 }
   0x2   :  { %s14_s7 = sshll.u32 %s163_s6, 4  ;;  %p116_p0 = scmp.ne.s32.totalorder %s201_s0, %s115_s10  ;;  %s15_s7 = int_to_ptr.vmem [resolvable:$true] %s14_s7 }
   0x3   :  { %p119_p1 = scmp.lt.u32.totalorder %s115_s10, %s201_s0 }
   0x5   :  { %p121_p2 = pnand %p119_p1, %p116_p0 }
   0x7   :  { %124 = shalt.err (!%p121_p2)
}
   0x8   :  { %s125_s15 = scalar_lea.vmem %s15_s7, 256  ;;  %p130_p4 = scmp.lt.s32.totalorder %s15_s7, %s15_s7 }
   0x9   :  { %p126_p3 = scmp.ne.s32.totalorder %s15_s7, %s125_s15  ;;  %p131_p5 = scmp.lt.s32.totalorder %s125_s15, %s125_s15 }
   0xb   :  { %p132_p6 = por %p131_p5, %p130_p4 }
   0xd   :  { %p133_p7 = pnand %p132_p6, %p126_p3 }
   0xf   :  { %136 = shalt.err (!%p133_p7)
}
  0x10   :  { %17 = dma.hbm_to_vmem [thread:$0]  %s201_s0, 256, %s15_s7, [#allocation3]  }
  0x11   :  { %159 = dma.done.wait [#allocation3], 256  }
  0x12   :  { %160 = vsyncadd [#allocation3], 4294967040  ;;  %v21_v0 = vld [vmem:[#allocation2] sm:$0xff]  ;;  %s164_s18 = smov 127   ;;  %v22_v1 = vld [vmem:[#allocation2 + $0x8] sm:$0xff]  ;;  %v23_v2 = vlaneseq  ;;  %vm60_vm0 = vcmask 1039360  }
  0x13   :  { %56 = vrot.lane.b32.xlu0 %v21_v0, %s164_s18  ;;  %s165_s0 = smov 112   ;;  %vm80_vm3 = vcmask 916480   ;;  %s166_s19 = smov [#allocation5]  }
  0x14   :  { %v24_v3 = vand.u32 127, %v23_v2  ;;  %s102_s20 = sshll.u32 %s166_s19, 4  ;;  %s103_s20 = int_to_ptr.vmem [resolvable:$true] %s102_s20 }
  0x15   :  { %s137_s21 = scalar_lea.vmem %s103_s20, 256  ;;  %p142_p9 = scmp.lt.s32.totalorder %s103_s20, %s103_s20 }
  0x16   :  { %v25_v4 = vadd.s32 128, %v24_v3  ;;  %v30_v5 = vand.u32 15, %v24_v3  ;;  %p138_p8 = scmp.ne.s32.totalorder %s103_s20, %s137_s21  ;;  %p143_p10 = scmp.lt.s32.totalorder %s137_s21, %s137_s21 }
  0x17   :  { %58 = vrot.lane.b32.xlu0 %v22_v1, %s164_s18 }
  0x18   :  { %v37_v7 = vand.u32 15, %v25_v4  ;;  %vm50_vm1 = vcmp.eq.s32.totalorder %v30_v5, 15  ;;  %vm53_vm4 = vcmp.ge.s32.totalorder %v25_v4, 240  ;;  %p144_p11 = por %p143_p10, %p142_p9 }
  0x1a   :  { %vm51_vm2 = vcmp.eq.s32.totalorder %v37_v7, 15  ;;  %p145_p12 = pnand %p144_p11, %p138_p8 }
  0x85   :  { %v57_v6 = vpop.permute.xlu0 %56 }
  0x89   :  { %v59_v8 = vpop.permute.xlu0 %58 }
  0x8a   :  { %v61_v9 = vsel %vm60_vm0, %v57_v6, %v59_v8  ;;  %v65_v10 = vsel %vm60_vm0, %v59_v8, %v57_v6 }
  0x8b   :  { %v70_v11 = vsel %vm50_vm1, %v21_v0, %v61_v9  ;;  %v71_v13 = vsel %vm51_vm2, %v22_v1, %v65_v10 }
  0x8c   :  { %v72_v12 = vmax.f32 %v21_v0, %v70_v11  ;;  %v73_v14 = vmax.f32 %v22_v1, %v71_v13 }
  0x8e   :  { %76 = vrot.lane.b32.xlu1 %v72_v12, %s165_s0 }
  0x92   :  { %78 = vrot.lane.b32.xlu1 %v73_v14, %s165_s0 }
 0x100   :  { %v77_v15 = vpop.permute.xlu1 %76 }
 0x104   :  { %v79_v16 = vpop.permute.xlu1 %78 }
 0x105   :  { %v81_v17 = vsel %vm80_vm3, %v77_v15, %v79_v16  ;;  %v85_v18 = vsel %vm80_vm3, %v79_v16, %v77_v15 }
 0x106   :  { %v91_v19 = vsel %vm53_vm4, %v73_v14, %v85_v18  ;;  %v92_v20 = vmax.f32 %v72_v12, %v81_v17 }
 0x107   :  { %v93_v21 = vmax.f32 %v73_v14, %v91_v19 }
 0x108   :  { %94 = vst [vmem:[#allocation5] sm:$0xff] %v92_v20 }
 0x109   :  { %95 = vst [vmem:[#allocation5 + $0x8] sm:$0xff] %v93_v21 }
 0x10a   :  { %148 = shalt.err (!%p145_p12)
}
 0x10b   :  { %s149_s24 = scalar_lea.hbm %s202_s1, 256 }
 0x10c   :  { %p150_p13 = scmp.ne.s32.totalorder %s202_s1, %s149_s24  ;;  %p153_p0 = scmp.lt.u32.totalorder %s149_s24, %s202_s1 }
 0x10e   :  { %p155_p1 = pnand %p153_p0, %p150_p13 }
 0x110   :  { %158 = shalt.err (!%p155_p1)
}
 0x111   :  { %105 = dma.vmem_to_hbm [thread:$0]  %s103_s20, 256, %s202_s1, [#allocation4]  }
 0x112   :  { %161 = dma.done.wait [#allocation4], 256  }
 0x113   :  { %162 = vsyncadd [#allocation4], 4294967040 }
 0x114   :  { %109 = vsyncpa [#allocation3], 1 }
 0x115   :  { %110 = vsyncpa [#allocation4], 1 }

</bundles_post_ra>
